<compile_context>
chip_gen: v6e
topology: v6e:2x2x1
jax: 0.10.0
libtpu: 0.0.40
codegen_flags: <defaults>
</compile_context>

<pallas_src>
import math
import functools

import jax
import jax.numpy as jnp
from jax import lax
from jax.experimental import pallas as pl
from jax.experimental.pallas import tpu as pltpu

LANE = 128  # TPU vreg lane width


def _round_up(n, m):
    return ((n + m - 1) // m) * m


# ----------------------------------------------------------------------------- kernels
def _pw_conv_kernel(x_ref, w_ref, b_ref, o_ref, *, negative_slope):
    # x_ref: (tile_m, Cin_p)   w_ref: (Cin_p, Cout_p)   b_ref: (1, Cout_p)   o_ref: (tile_m, Cout_p)
    y = jnp.dot(x_ref[...], w_ref[...], preferred_element_type=jnp.float32)
    y = y + b_ref[...].astype(jnp.float32)
    if negative_slope is not None:
        y = jnp.where(y >= 0, y, jnp.float32(negative_slope) * y)
    o_ref[...] = y.astype(o_ref.dtype)


def _pw_conv_add_kernel(x_ref, r_ref, w_ref, b_ref, o_ref, *, negative_slope):
    # Fused residual:  (x + r) @ w + b   (saves an extra HBM round-trip for the sum)
    s = x_ref[...] + r_ref[...]
    y = jnp.dot(s, w_ref[...], preferred_element_type=jnp.float32)
    y = y + b_ref[...].astype(jnp.float32)
    if negative_slope is not None:
        y = jnp.where(y >= 0, y, jnp.float32(negative_slope) * y)
    o_ref[...] = y.astype(o_ref.dtype)


# ----------------------------------------------------------------------------- wrapper
def pointwise_conv_1x1(x, w, b, *, negative_slope=None, residual=None, tile_m=256):
    """1x1 Conv2d (+ optional LeakyReLU, optional fused residual add) on NCHW via Pallas.

    x, residual: (B, C_in, H, W).  w: (C_in, C_out).  b: (C_out,).  Returns (B, C_out, H, W).
    """
    B, C_in, H, W = x.shape
    C_out = w.shape[1]
    M = B * H * W

    # Lane-dense channel padding (unmasked full-width loads/stores) + ragged-M padding.
    Cin_p = _round_up(max(C_in, LANE), LANE)
    Cout_p = _round_up(max(C_out, LANE), LANE)
    Mp = _round_up(M, tile_m)

    def to_2d(t):
        t2 = jnp.transpose(t, (0, 2, 3, 1)).reshape(M, C_in)
        return jnp.pad(t2, ((0, Mp - M), (0, Cin_p - C_in)))

    x2d = to_2d(x)
    w_p = jnp.pad(w, ((0, Cin_p - C_in), (0, Cout_p - C_out)))
    b_p = jnp.pad(b, (0, Cout_p - C_out)).reshape(1, Cout_p)

    x_spec = pl.BlockSpec((tile_m, Cin_p), lambda i: (i, 0))
    w_spec = pl.BlockSpec((Cin_p, Cout_p), lambda i: (0, 0))   # weights resident across grid
    b_spec = pl.BlockSpec((1, Cout_p), lambda i: (0, 0))
    o_spec = pl.BlockSpec((tile_m, Cout_p), lambda i: (i, 0))

    itemsize = jnp.dtype(x.dtype).itemsize
    n_inputs = 1 if residual is None else 2
    cost = pl.CostEstimate(
        flops=2 * Mp * Cin_p * Cout_p,
        transcendentals=0,
        bytes_accessed=(n_inputs * Mp * Cin_p + Mp * Cout_p
                        + Cin_p * Cout_p + Cout_p) * itemsize,
    )

    if residual is None:
        kernel = functools.partial(_pw_conv_kernel, negative_slope=negative_slope)
        in_specs = [x_spec, w_spec, b_spec]
        args = (x2d, w_p, b_p)
    else:
        kernel = functools.partial(_pw_conv_add_kernel, negative_slope=negative_slope)
        in_specs = [x_spec, x_spec, w_spec, b_spec]
        args = (x2d, to_2d(residual), w_p, b_p)

    out2d = pl.pallas_call(
        kernel,
        out_shape=jax.ShapeDtypeStruct((Mp, Cout_p), x.dtype),
        grid_spec=pltpu.PrefetchScalarGridSpec(
            num_scalar_prefetch=0,
            grid=(Mp // tile_m,),
            in_specs=in_specs,
            out_specs=o_spec,
        ),
        compiler_params=pltpu.CompilerParams(
            dimension_semantics=("parallel",),
        ),
        cost_estimate=cost,
    )(*args)

    out = out2d[:M, :C_out].reshape(B, H, W, C_out)
    return jnp.transpose(out, (0, 3, 1, 2))


def _fourier_unit(x, w_fu, b_fu, *, tile_m):
    """FourierUnit: rfft2 -> 1x1 conv (+LeakyReLU) on interleaved (real,imag) channels -> irfft2."""
    B, C, H, W = x.shape
    ffted = jnp.fft.rfft2(x, axes=(-2, -1), norm="ortho")            # (B, C, H, Wf) complex
    Wf = ffted.shape[-1]
    # torch channel layout after permute/view: [c0_re, c0_im, c1_re, c1_im, ...]
    stacked = jnp.stack([ffted.real, ffted.imag], axis=2).reshape(B, 2 * C, H, Wf)
    y = pointwise_conv_1x1(stacked, w_fu, b_fu, negative_slope=0.2, tile_m=tile_m)
    y = y.reshape(B, C, 2, H, Wf)
    comp = lax.complex(y[:, :, 0], y[:, :, 1])
    return jnp.fft.irfft2(comp, s=(H, W), axes=(-2, -1), norm="ortho")


@functools.partial(jax.jit, static_argnames=("tile_m",))
def spectral_transform_pallas(x, w1, b1, w_fu, b_fu, w2, b2, *, tile_m=256):
    """x: (B, C, H, W) NCHW.  Weights stored as (C_in, C_out) (transposed vs torch Conv2d)."""
    x1 = pointwise_conv_1x1(x, w1, b1, negative_slope=0.2, tile_m=tile_m)   # conv1 + LeakyReLU
    fu = _fourier_unit(x1, w_fu, b_fu, tile_m=tile_m)                       # FourierUnit
    out = pointwise_conv_1x1(x1, w2, b2, residual=fu, tile_m=tile_m)        # conv2(x1 + fu)
    return out


# ----------------------------------------------------------------------------- reference
def spectral_transform_reference(x, w1, b1, w_fu, b_fu, w2, b2):
    """Pure-JAX mirror of the PyTorch SpectralTransform.forward (last_conv=False)."""
    def pw(t, w, b):
        return jnp.einsum("bchw,cd->bdhw", t, w) + b[None, :, None, None]

    def lrelu(v):
        return jnp.where(v >= 0, v, 0.2 * v)

    x1 = lrelu(pw(x, w1, b1))
    B, C, H, W = x1.shape
    ff = jnp.fft.rfft2(x1, axes=(-2, -1), norm="ortho")
    st = jnp.stack([ff.real, ff.imag], axis=2).reshape(B, 2 * C, H, ff.shape[-1])
    y = lrelu(pw(st, w_fu, b_fu))
    y = y.reshape(B, C, 2, H, ff.shape[-1])
    fu = jnp.fft.irfft2(lax.complex(y[:, :, 0], y[:, :, 1]), s=(H, W),
                        axes=(-2, -1), norm="ortho")
    return pw(x1 + fu, w2, b2)


def init_params(key, embed_dim, dtype=jnp.float32):
    """Synthetic Conv2d params (uniform +-1/sqrt(fan_in)), stored as (C_in, C_out)."""
    half = embed_dim // 2
    ks = jax.random.split(key, 6)

    def conv_params(kw, kb, c_in, c_out):
        bound = 1.0 / math.sqrt(c_in)
        w = jax.random.uniform(kw, (c_in, c_out), dtype, -bound, bound)
        b = jax.random.uniform(kb, (c_out,), dtype, -bound, bound)
        return w, b

    w1, b1 = conv_params(ks[0], ks[1], embed_dim, half)        # conv1: C -> C/2
    w_fu, b_fu = conv_params(ks[2], ks[3], 2 * half, 2 * half)  # FourierUnit: C -> C
    w2, b2 = conv_params(ks[4], ks[5], half, embed_dim)         # conv2: C/2 -> C
    return w1, b1, w_fu, b_fu, w2, b2


if __name__ == "__main__":
    key = jax.random.PRNGKey(0)
    kx, kp = jax.random.split(key)

    B, embed_dim, H, W = 2, 32, 16, 16
    x = jax.random.normal(kx, (B, embed_dim, H, W), jnp.float32)
    params = init_params(kp, embed_dim)

    out = spectral_transform_pallas(x, *params, tile_m=256)
    out = jax.block_until_ready(out)

    ref = spectral_transform_reference(x, *params)
    assert out.shape == (B, embed_dim, H, W)
    assert jnp.allclose(out, ref, atol=1e-3, rtol=1e-3), (
        f"mismatch vs reference, max abs diff = {jnp.max(jnp.abs(out - ref))}")

    print("KERNEL_OK")
</pallas_src>

<mosaic_0001>
module attributes {stable_mosaic.version = 11 : i64} {
  func.func @_pw_conv_kernel(%arg0: i32, %arg1: memref<256x128xf32, #tpu.memory_space<vmem>>, %arg2: memref<128x128xf32, #tpu.memory_space<vmem>>, %arg3: memref<1x128xf32, #tpu.memory_space<vmem>>, %arg4: memref<256x128xf32, #tpu.memory_space<vmem>>) attributes {dimension_semantics = [#tpu.dimension_semantics<parallel>], iteration_bounds = array<i64: 2>, scalar_prefetch = 0 : i64, scratch_operands = 0 : i64, tpu.core_type = #tpu.core_type<tc>, window_params = [{transform_indices = @transform_0, window_bounds = array<i64: 256, 128>}, {pipeline_mode = #tpu.pipeline_mode<synchronous>, transform_indices = @transform_1, window_bounds = array<i64: 128, 128>}, {pipeline_mode = #tpu.pipeline_mode<synchronous>, transform_indices = @transform_2, window_bounds = array<i64: 1, 128>}, {transform_indices = @transform_3, window_bounds = array<i64: 256, 128>}]} {
    %c0 = arith.constant 0 : index
    %c0_0 = arith.constant 0 : index
    %0 = vector.load %arg1[%c0, %c0_0] : memref<256x128xf32, #tpu.memory_space<vmem>>, vector<256x128xf32>
    %c0_1 = arith.constant 0 : index
    %c0_2 = arith.constant 0 : index
    %1 = vector.load %arg2[%c0_1, %c0_2] : memref<128x128xf32, #tpu.memory_space<vmem>>, vector<128x128xf32>
    %cst = arith.constant dense<0.000000e+00> : vector<256x128xf32>
    %2 = tpu.matmul %0, %1, %cst {dimension_numbers = #tpu.dot_dimension_numbers<[1], [0], [0], [1], [0, 0, 1, 1], [], []>} : vector<256x128xf32>, vector<128x128xf32>, vector<256x128xf32> -> vector<256x128xf32>
    %c0_3 = arith.constant 0 : index
    %c0_4 = arith.constant 0 : index
    %3 = vector.load %arg3[%c0_3, %c0_4] : memref<1x128xf32, #tpu.memory_space<vmem>>, vector<1x128xf32>
    %4 = vector.broadcast %3 : vector<1x128xf32> to vector<256x128xf32>
    %5 = arith.addf %2, %4 : vector<256x128xf32>
    %cst_5 = arith.constant 0.000000e+00 : f32
    %6 = vector.broadcast %cst_5 : f32 to vector<256x128xf32>
    %7 = arith.cmpf oge, %5, %6 : vector<256x128xf32>
    %cst_6 = arith.constant 2.000000e-01 : f32
    %8 = vector.broadcast %cst_6 : f32 to vector<256x128xf32>
    %9 = arith.mulf %8, %5 : vector<256x128xf32>
    %10 = arith.select %7, %5, %9 : vector<256x128xi1>, vector<256x128xf32>
    %c0_7 = arith.constant 0 : index
    %c0_8 = arith.constant 0 : index
    %11 = vector.load %arg4[%c0_7, %c0_8] : memref<256x128xf32, #tpu.memory_space<vmem>>, vector<256x128xf32>
    tpu.vector_store %arg4[%c0_7, %c0_8], %10 {strides = array<i32>} : memref<256x128xf32, #tpu.memory_space<vmem>>, vector<256x128xf32>,
    return
  }
  func.func @transform_0(%arg0: i32) -> (i32, i32) {
    %c0_i32 = arith.constant 0 : i32
    %c0_i32_0 = arith.constant 0 : i32
    return %arg0, %c0_i32 : i32, i32
  }
  func.func @transform_1(%arg0: i32) -> (i32, i32) {
    %c0_i32 = arith.constant 0 : i32
    %c0_i32_0 = arith.constant 0 : i32
    %c0_i32_1 = arith.constant 0 : i32
    return %c0_i32, %c0_i32_0 : i32, i32
  }
  func.func @transform_2(%arg0: i32) -> (i32, i32) {
    %c0_i32 = arith.constant 0 : i32
    %c0_i32_0 = arith.constant 0 : i32
    %c0_i32_1 = arith.constant 0 : i32
    return %c0_i32, %c0_i32_0 : i32, i32
  }
  func.func @transform_3(%arg0: i32) -> (i32, i32) {
    %c0_i32 = arith.constant 0 : i32
    %c0_i32_0 = arith.constant 0 : i32
    return %arg0, %c0_i32 : i32, i32
  }
}

module attributes {stable_mosaic.version = 11 : i64} {
  func.func @_pw_conv_add_kernel(%arg0: i32, %arg1: memref<256x128xf32, #tpu.memory_space<vmem>>, %arg2: memref<256x128xf32, #tpu.memory_space<vmem>>, %arg3: memref<128x128xf32, #tpu.memory_space<vmem>>, %arg4: memref<1x128xf32, #tpu.memory_space<vmem>>, %arg5: memref<256x128xf32, #tpu.memory_space<vmem>>) attributes {dimension_semantics = [#tpu.dimension_semantics<parallel>], iteration_bounds = array<i64: 2>, scalar_prefetch = 0 : i64, scratch_operands = 0 : i64, tpu.core_type = #tpu.core_type<tc>, window_params = [{transform_indices = @transform_0, window_bounds = array<i64: 256, 128>}, {transform_indices = @transform_1, window_bounds = array<i64: 256, 128>}, {pipeline_mode = #tpu.pipeline_mode<synchronous>, transform_indices = @transform_2, window_bounds = array<i64: 128, 128>}, {pipeline_mode = #tpu.pipeline_mode<synchronous>, transform_indices = @transform_3, window_bounds = array<i64: 1, 128>}, {transform_indices = @transform_4, window_bounds = array<i64: 256, 128>}]} {
    %c0 = arith.constant 0 : index
    %c0_0 = arith.constant 0 : index
    %0 = vector.load %arg1[%c0, %c0_0] : memref<256x128xf32, #tpu.memory_space<vmem>>, vector<256x128xf32>
    %c0_1 = arith.constant 0 : index
    %c0_2 = arith.constant 0 : index
    %1 = vector.load %arg2[%c0_1, %c0_2] : memref<256x128xf32, #tpu.memory_space<vmem>>, vector<256x128xf32>
    %2 = arith.addf %0, %1 : vector<256x128xf32>
    %c0_3 = arith.constant 0 : index
    %c0_4 = arith.constant 0 : index
    %3 = vector.load %arg3[%c0_3, %c0_4] : memref<128x128xf32, #tpu.memory_space<vmem>>, vector<128x128xf32>
    %cst = arith.constant dense<0.000000e+00> : vector<256x128xf32>
    %4 = tpu.matmul %2, %3, %cst {dimension_numbers = #tpu.dot_dimension_numbers<[1], [0], [0], [1], [0, 0, 1, 1], [], []>} : vector<256x128xf32>, vector<128x128xf32>, vector<256x128xf32> -> vector<256x128xf32>
    %c0_5 = arith.constant 0 : index
    %c0_6 = arith.constant 0 : index
    %5 = vector.load %arg4[%c0_5, %c0_6] : memref<1x128xf32, #tpu.memory_space<vmem>>, vector<1x128xf32>
    %6 = vector.broadcast %5 : vector<1x128xf32> to vector<256x128xf32>
    %7 = arith.addf %4, %6 : vector<256x128xf32>
    %c0_7 = arith.constant 0 : index
    %c0_8 = arith.constant 0 : index
    %8 = vector.load %arg5[%c0_7, %c0_8] : memref<256x128xf32, #tpu.memory_space<vmem>>, vector<256x128xf32>
    tpu.vector_store %arg5[%c0_7, %c0_8], %7 {strides = array<i32>} : memref<256x128xf32, #tpu.memory_space<vmem>>, vector<256x128xf32>,
    return
  }
  func.func @transform_0(%arg0: i32) -> (i32, i32) {
    %c0_i32 = arith.constant 0 : i32
    %c0_i32_0 = arith.constant 0 : i32
    return %arg0, %c0_i32 : i32, i32
  }
  func.func @transform_1(%arg0: i32) -> (i32, i32) {
    %c0_i32 = arith.constant 0 : i32
    %c0_i32_0 = arith.constant 0 : i32
    return %arg0, %c0_i32 : i32, i32
  }
  func.func @transform_2(%arg0: i32) -> (i32, i32) {
    %c0_i32 = arith.constant 0 : i32
    %c0_i32_0 = arith.constant 0 : i32
    %c0_i32_1 = arith.constant 0 : i32
    return %c0_i32, %c0_i32_0 : i32, i32
  }
  func.func @transform_3(%arg0: i32) -> (i32, i32) {
    %c0_i32 = arith.constant 0 : i32
    %c0_i32_0 = arith.constant 0 : i32
    %c0_i32_1 = arith.constant 0 : i32
    return %c0_i32, %c0_i32_0 : i32, i32
  }
  func.func @transform_4(%arg0: i32) -> (i32, i32) {
    %c0_i32 = arith.constant 0 : i32
    %c0_i32_0 = arith.constant 0 : i32
    return %arg0, %c0_i32 : i32, i32
  }
}

</mosaic_0001>

<bundles_post_ra>
// kernel: spectral_transform_pallas.3
= control target key start
LH: loop header
LB: loop body
LE: loop exit
PB: predicated region body
PF: predicated region fallthrough
CT: control target
= control target key end

     0   :  { %s846_s12 = smov 0   ;;  %s1025_s0 = inlined_call_operand.vmem [shape: f32[512,128], index: 0, kind: input, shape index: {}]   ;;  %s1026_s1 = inlined_call_operand.vmem [shape: f32[128,128], index: 1, kind: input, shape index: {}]   ;;  %s1027_s2 = inlined_call_operand.vmem [shape: f32[1,128], index: 2, kind: input, shape index: {}]   ;;  %s1028_s3 = inlined_call_operand.vmem [shape: f32[512,128], index: 3, kind: output, shape index: {}]  }
   0x1 LB: > { %s638_s13 = sadd.s32 4294967295, %s824_s12   ;;  %p642_p0 = scmp.ge.s32.totalorder %s824_s12, 1  ;;  %s824_s12 = sphi %s846_s12, %s13_s12  }
   0x2   : > { %p138_p1 = scmp.lt.s32.totalorder %s824_s12, 3 }
   0x4   : > { %p139_p2 = pnand %p642_p0, %p138_p1 }
   0x5   : > { %s643_s30 = sshll.u32 (!%p139_p2), %s638_s13, 5 }
   0x6   : > { %142 = sbr.rel (%p139_p2) target bundleno = 275 (0x113), region = 32  ;;  %p163_p3 = scmp.lt.s32.totalorder (!%p139_p2), %s643_s30, 63 }
   0xb   : > { %v221_v0 = vld [vmem:[%s1026_s1 + $0x78] sm:$0xff]  ;;  %v220_v1 = vld [vmem:[%s1026_s1 + $0x70] sm:$0xff]  ;;  %v219_v2 = vld [vmem:[%s1026_s1 + $0x68] sm:$0xff]  ;;  %s1030_s30 = smov (!%p163_p3, %s643_s30), 63 }
   0xc   : > { %698 = vmatprep.subr.mxu0 %v221_v0  ;;  %778 = vmatprep.subr.mxu1 %v221_v0  ;;  %v218_v3 = vld [vmem:[%s1026_s1 + $0x60] sm:$0xff]  ;;  %v217_v4 = vld [vmem:[%s1026_s1 + $0x58] sm:$0xff]  ;;  %v216_v5 = vld [vmem:[%s1026_s1 + $0x50] sm:$0xff]  ;;  %s644_s17 = sshll.u32 %s1030_s30, 3 }
   0xd   : > { %699 = vmatpush3.msra.mxu0 %v221_v0  ;;  %794 = vmatpush3.msra.mxu1 %v221_v0  ;;  %v215_v6 = vld [vmem:[%s1026_s1 + $0x48] sm:$0xff]  ;;  %v214_v7 = vld [vmem:[%s1026_s1 + $0x40] sm:$0xff]  ;;  %v213_v8 = vld [vmem:[%s1026_s1 + $0x38] sm:$0xff]  ;;  %s909_s22 = scalar_lea.vmem %s1025_s0, %s644_s17  ;;  %s958_s29 = scalar_lea.vmem %s1028_s3, %s644_s17 }
   0xe   : > { %700 = vmatprep.subr.mxu0 %v220_v1  ;;  %779 = vmatprep.subr.mxu1 %v220_v1  ;;  %v212_v9 = vld [vmem:[%s1026_s1 + $0x30] sm:$0xff]  ;;  %v211_v10 = vld [vmem:[%s1026_s1 + $0x28] sm:$0xff]  ;;  %v210_v11 = vld [vmem:[%s1026_s1 + $0x20] sm:$0xff] }
   0xf   : > { %701 = vmatpush3.msra.mxu0 %v220_v1  ;;  %795 = vmatpush3.msra.mxu1 %v220_v1  ;;  %v209_v12 = vld [vmem:[%s1026_s1 + $0x18] sm:$0xff]  ;;  %v208_v13 = vld [vmem:[%s1026_s1 + $0x10] sm:$0xff]  ;;  %v207_v14 = vld [vmem:[%s1026_s1 + $0x8] sm:$0xff] }
  0x10   : > { %702 = vmatprep.subr.mxu0 %v219_v2  ;;  %780 = vmatprep.subr.mxu1 %v219_v2  ;;  %v206_v15 = vld [vmem:[%s1026_s1] sm:$0xff]  ;;  %v175_v18 = vld [vmem:[%s909_s22 + $0x8] sm:$0xff]  ;;  %v176_v20 = vld [vmem:[%s909_s22 + $0x10] sm:$0xff] }
  0x11   : > { %703 = vmatpush3.msra.mxu0 %v219_v2  ;;  %796 = vmatpush3.msra.mxu1 %v219_v2  ;;  %v174_v16 = vld [vmem:[%s909_s22] sm:$0xff]  ;;  %v191_v19 = vld [vmem:[%s909_s22 + $0x88] sm:$0xff]  ;;  %v192_v21 = vld [vmem:[%s909_s22 + $0x90] sm:$0xff] }
  0x12   : > { %704 = vmatprep.subr.mxu0 %v218_v3  ;;  %781 = vmatprep.subr.mxu1 %v218_v3  ;;  %v190_v17 = vld [vmem:[%s909_s22 + $0x80] sm:$0xff]  ;;  %v177_v22 = vld [vmem:[%s909_s22 + $0x18] sm:$0xff]  ;;  %v179_v26 = vld [vmem:[%s909_s22 + $0x28] sm:$0xff] }
  0x13   : > { %705 = vmatpush3.msra.mxu0 %v218_v3  ;;  %797 = vmatpush3.msra.mxu1 %v218_v3  ;;  %v193_v23 = vld [vmem:[%s909_s22 + $0x98] sm:$0xff]  ;;  %v178_v24 = vld [vmem:[%s909_s22 + $0x20] sm:$0xff]  ;;  %v195_v27 = vld [vmem:[%s909_s22 + $0xa8] sm:$0xff] }
  0x14   : > { %706 = vmatprep.subr.mxu0 %v217_v4  ;;  %782 = vmatprep.subr.mxu1 %v217_v4  ;;  %v194_v25 = vld [vmem:[%s909_s22 + $0xa0] sm:$0xff]  ;;  %v180_v28 = vld [vmem:[%s909_s22 + $0x30] sm:$0xff]  ;;  %v181_v30 = vld [vmem:[%s909_s22 + $0x38] sm:$0xff] }
  0x15   : > { %707 = vmatpush3.msra.mxu0 %v217_v4  ;;  %798 = vmatpush3.msra.mxu1 %v217_v4  ;;  %v196_v29 = vld [vmem:[%s909_s22 + $0xb0] sm:$0xff]  ;;  %v197_v31 = vld [vmem:[%s909_s22 + $0xb8] sm:$0xff]  ;;  %v182_v32 = vld [vmem:[%s909_s22 + $0x40] sm:$0xff] }
  0x16   : > { %708 = vmatprep.subr.mxu0 %v216_v5  ;;  %783 = vmatprep.subr.mxu1 %v216_v5  ;;  %v198_v33 = vld [vmem:[%s909_s22 + $0xc0] sm:$0xff]  ;;  %v183_v34 = vld [vmem:[%s909_s22 + $0x48] sm:$0xff]  ;;  %v184_v36 = vld [vmem:[%s909_s22 + $0x50] sm:$0xff] }
  0x17   : > { %709 = vmatpush3.msra.mxu0 %v216_v5  ;;  %799 = vmatpush3.msra.mxu1 %v216_v5  ;;  %v199_v35 = vld [vmem:[%s909_s22 + $0xc8] sm:$0xff]  ;;  %v200_v37 = vld [vmem:[%s909_s22 + $0xd0] sm:$0xff]  ;;  %v185_v38 = vld [vmem:[%s909_s22 + $0x58] sm:$0xff] }
  0x18   : > { %710 = vmatprep.subr.mxu0 %v215_v6  ;;  %784 = vmatprep.subr.mxu1 %v215_v6  ;;  %v201_v39 = vld [vmem:[%s909_s22 + $0xd8] sm:$0xff]  ;;  %v186_v40 = vld [vmem:[%s909_s22 + $0x60] sm:$0xff]  ;;  %v187_v42 = vld [vmem:[%s909_s22 + $0x68] sm:$0xff] }
  0x19   : > { %711 = vmatpush3.msra.mxu0 %v215_v6  ;;  %800 = vmatpush3.msra.mxu1 %v215_v6  ;;  %v202_v41 = vld [vmem:[%s909_s22 + $0xe0] sm:$0xff]  ;;  %v203_v43 = vld [vmem:[%s909_s22 + $0xe8] sm:$0xff]  ;;  %v188_v44 = vld [vmem:[%s909_s22 + $0x70] sm:$0xff] }
  0x1a   : > { %712 = vmatprep.subr.mxu0 %v214_v7  ;;  %785 = vmatprep.subr.mxu1 %v214_v7  ;;  %v204_v45 = vld [vmem:[%s909_s22 + $0xf0] sm:$0xff]  ;;  %v189_v46 = vld [vmem:[%s909_s22 + $0x78] sm:$0xff]  ;;  %v949_v48 = vld [vmem:[%s1027_s2] ss:$0 sm:$0xff] }
  0x1b   : > { %713 = vmatpush3.msra.mxu0 %v214_v7  ;;  %801 = vmatpush3.msra.mxu1 %v214_v7  ;;  %v205_v47 = vld [vmem:[%s909_s22 + $0xf8] sm:$0xff] }
  0x1c   : > { %714 = vmatprep.subr.mxu0 %v213_v8  ;;  %786 = vmatprep.subr.mxu1 %v213_v8 }
  0x1d   : > { %715 = vmatpush3.msra.mxu0 %v213_v8  ;;  %802 = vmatpush3.msra.mxu1 %v213_v8 }
  0x1e   : > { %716 = vmatprep.subr.mxu0 %v212_v9  ;;  %787 = vmatprep.subr.mxu1 %v212_v9 }
  0x1f   : > { %717 = vmatpush3.msra.mxu0 %v212_v9  ;;  %803 = vmatpush3.msra.mxu1 %v212_v9 }
  0x20   : > { %718 = vmatprep.subr.mxu0 %v211_v10  ;;  %788 = vmatprep.subr.mxu1 %v211_v10 }
  0x21   : > { %719 = vmatpush3.msra.mxu0 %v211_v10  ;;  %804 = vmatpush3.msra.mxu1 %v211_v10 }
  0x22   : > { %720 = vmatprep.subr.mxu0 %v210_v11  ;;  %789 = vmatprep.subr.mxu1 %v210_v11 }
  0x23   : > { %721 = vmatpush3.msra.mxu0 %v210_v11  ;;  %805 = vmatpush3.msra.mxu1 %v210_v11 }
  0x24   : > { %722 = vmatprep.subr.mxu0 %v209_v12  ;;  %790 = vmatprep.subr.mxu1 %v209_v12 }
  0x25   : > { %723 = vmatpush3.msra.mxu0 %v209_v12  ;;  %806 = vmatpush3.msra.mxu1 %v209_v12 }
  0x26   : > { %724 = vmatprep.subr.mxu0 %v208_v13  ;;  %791 = vmatprep.subr.mxu1 %v208_v13 }
  0x27   : > { %725 = vmatpush3.msra.mxu0 %v208_v13  ;;  %807 = vmatpush3.msra.mxu1 %v208_v13 }
  0x28   : > { %726 = vmatprep.subr.mxu0 %v207_v14  ;;  %792 = vmatprep.subr.mxu1 %v207_v14 }
  0x29   : > { %727 = vmatpush3.msra.mxu0 %v207_v14  ;;  %808 = vmatpush3.msra.mxu1 %v207_v14 }
  0x2a   : > { %728 = vmatprep.subr.mxu0 %v206_v15  ;;  %793 = vmatprep.subr.mxu1 %v206_v15 }
  0x2b   : > { %729 = vmatpush3.msra.mxu0 %v206_v15  ;;  %809 = vmatpush3.msra.mxu1 %v206_v15 }
  0x2c   : > { %730 = vmatprep.mubr.f32.mxu0 %v174_v16  ;;  %754 = vmatprep.mubr.f32.mxu1 %v190_v17 }
  0x2d   : > { %731 = vmatmul.mubr.f32.vlgmr.msra.gmra.mxu0 %v175_v18  ;;  %755 = vmatmul.mubr.f32.vlgmr.msra.gmra.mxu1 %v191_v19 }
  0x2e   : > { %733 = vmatprep.mubr.f32.mxu0 %v176_v20  ;;  %757 = vmatprep.mubr.f32.mxu1 %v192_v21 }
  0x31   : > { %734 = vmatmul.mubr.f32.gmra.mxu0 %v177_v22  ;;  %758 = vmatmul.mubr.f32.gmra.mxu1 %v193_v23 }
  0x32   : > { %736 = vmatprep.mubr.f32.mxu0 %v178_v24  ;;  %760 = vmatprep.mubr.f32.mxu1 %v194_v25 }
  0x35   : > { %737 = vmatmul.mubr.f32.gmra.mxu0 %v179_v26  ;;  %761 = vmatmul.mubr.f32.gmra.mxu1 %v195_v27 }
  0x36   : > { %739 = vmatprep.mubr.f32.mxu0 %v180_v28  ;;  %763 = vmatprep.mubr.f32.mxu1 %v196_v29 }
  0x39   : > { %740 = vmatmul.mubr.f32.gmra.mxu0 %v181_v30  ;;  %764 = vmatmul.mubr.f32.gmra.mxu1 %v197_v31 }
  0x3a   : > { %742 = vmatprep.mubr.f32.mxu0 %v182_v32  ;;  %766 = vmatprep.mubr.f32.mxu1 %v198_v33 }
  0x3d   : > { %743 = vmatmul.mubr.f32.gmra.mxu0 %v183_v34  ;;  %767 = vmatmul.mubr.f32.gmra.mxu1 %v199_v35 }
  0x3e   : > { %745 = vmatprep.mubr.f32.mxu0 %v184_v36  ;;  %769 = vmatprep.mubr.f32.mxu1 %v200_v37 }
  0x41   : > { %746 = vmatmul.mubr.f32.gmra.mxu0 %v185_v38  ;;  %770 = vmatmul.mubr.f32.gmra.mxu1 %v201_v39 }
  0x42   : > { %748 = vmatprep.mubr.f32.mxu0 %v186_v40  ;;  %772 = vmatprep.mubr.f32.mxu1 %v202_v41 }
  0x45   : > { %749 = vmatmul.mubr.f32.gmra.mxu0 %v187_v42  ;;  %773 = vmatmul.mubr.f32.gmra.mxu1 %v203_v43 }
  0x46   : > { %751 = vmatprep.mubr.f32.mxu0 %v188_v44  ;;  %775 = vmatprep.mubr.f32.mxu1 %v204_v45 }
  0x49   : > { %752 = vmatmul.mubr.f32.gmra.mxu0 %v189_v46  ;;  %776 = vmatmul.mubr.f32.gmra.mxu1 %v205_v47 }
  0xed   : > { %v732_v49 = vpop.f32.mrf.mxu0  ;;  %v756_v50 = vpop.f32.mrf.mxu1 }
  0xee   : > { %v301_v51 = vadd.f32 %v732_v49, %v949_v48  ;;  %v381_v52 = vadd.f32 %v756_v50, %v949_v48 }
  0xef   : > { %v295_v53 = vpop.f32.mrf.mxu0  ;;  %v375_v54 = vpop.f32.mrf.mxu1 }
  0xf0   : > { %vm455_vm0 = vcmp.ge.f32.partialorder %v301_v51, 0.0  ;;  %v487_v55 = vmul.f32 0.2, %v301_v51  ;;  %vm471_vm1 = vcmp.ge.f32.partialorder %v381_v52, 0.0  ;;  %v503_v56 = vmul.f32 0.2, %v381_v52 }
  0xf1   : > { %v296_v57 = vadd.f32 %v949_v48, %v295_v53  ;;  %v376_v58 = vadd.f32 %v949_v48, %v375_v54  ;;  %v735_v59 = vpop.f32.mrf.mxu0  ;;  %v759_v60 = vpop.f32.mrf.mxu1 }
  0xf2   : > { %v519_v61 = vsel %vm455_vm0, %v301_v51, %v487_v55  ;;  %v535_v62 = vsel %vm471_vm1, %v381_v52, %v503_v56  ;;  %v311_v63 = vadd.f32 %v735_v59, %v949_v48  ;;  %v391_v0 = vadd.f32 %v759_v60, %v949_v48 }
  0xf3   : > { %551 = vst [vmem:[%s958_s29 + $0x8] sm:$0xff] %v519_v61  ;;  %567 = vst [vmem:[%s958_s29 + $0x88] sm:$0xff] %v535_v62  ;;  %vm454_vm2 = vcmp.ge.f32.partialorder %v296_v57, 0.0  ;;  %v486_v1 = vmul.f32 0.2, %v296_v57  ;;  %vm470_vm3 = vcmp.ge.f32.partialorder %v376_v58, 0.0  ;;  %v305_v3 = vpop.f32.mrf.mxu0  ;;  %v385_v4 = vpop.f32.mrf.mxu1 }
  0xf4   : > { %v502_v2 = vmul.f32 0.2, %v376_v58  ;;  %vm457_vm4 = vcmp.ge.f32.partialorder %v311_v63, 0.0  ;;  %v489_v5 = vmul.f32 0.2, %v311_v63  ;;  %vm473_vm5 = vcmp.ge.f32.partialorder %v391_v0, 0.0 }
  0xf5   : > { %v505_v6 = vmul.f32 0.2, %v391_v0  ;;  %v518_v7 = vsel %vm454_vm2, %v296_v57, %v486_v1  ;;  %v306_v9 = vadd.f32 %v949_v48, %v305_v3  ;;  %v386_v10 = vadd.f32 %v949_v48, %v385_v4  ;;  %v738_v11 = vpop.f32.mrf.mxu0  ;;  %v762_v12 = vpop.f32.mrf.mxu1 }
  0xf6   : > { %v534_v8 = vsel %vm470_vm3, %v376_v58, %v502_v2  ;;  %550 = vst [vmem:[%s958_s29] sm:$0xff] %v518_v7  ;;  %v521_v13 = vsel %vm457_vm4, %v311_v63, %v489_v5  ;;  %v321_v15 = vadd.f32 %v738_v11, %v949_v48  ;;  %v401_v16 = vadd.f32 %v762_v12, %v949_v48 }
  0xf7   : > { %566 = vst [vmem:[%s958_s29 + $0x80] sm:$0xff] %v534_v8  ;;  %v537_v14 = vsel %vm473_vm5, %v391_v0, %v505_v6  ;;  %553 = vst [vmem:[%s958_s29 + $0x18] sm:$0xff] %v521_v13  ;;  %vm456_vm6 = vcmp.ge.f32.partialorder %v306_v9, 0.0  ;;  %v488_v17 = vmul.f32 0.2, %v306_v9  ;;  %vm472_vm7 = vcmp.ge.f32.partialorder %v386_v10, 0.0  ;;  %v315_v19 = vpop.f32.mrf.mxu0  ;;  %v395_v20 = vpop.f32.mrf.mxu1 }
  0xf8   : > { %569 = vst [vmem:[%s958_s29 + $0x98] sm:$0xff] %v537_v14  ;;  %v504_v18 = vmul.f32 0.2, %v386_v10  ;;  %vm459_vm8 = vcmp.ge.f32.partialorder %v321_v15, 0.0  ;;  %v491_v21 = vmul.f32 0.2, %v321_v15  ;;  %v316_v25 = vadd.f32 %v949_v48, %v315_v19 }
  0xf9   : > { %vm475_vm9 = vcmp.ge.f32.partialorder %v401_v16, 0.0  ;;  %v507_v22 = vmul.f32 0.2, %v401_v16  ;;  %v520_v23 = vsel %vm456_vm6, %v306_v9, %v488_v17  ;;  %v396_v26 = vadd.f32 %v949_v48, %v395_v20  ;;  %v741_v27 = vpop.f32.mrf.mxu0  ;;  %v765_v28 = vpop.f32.mrf.mxu1 }
  0xfa   : > { %v536_v24 = vsel %vm472_vm7, %v386_v10, %v504_v18  ;;  %552 = vst [vmem:[%s958_s29 + $0x10] sm:$0xff] %v520_v23  ;;  %v523_v29 = vsel %vm459_vm8, %v321_v15, %v491_v21  ;;  %v331_v31 = vadd.f32 %v741_v27, %v949_v48  ;;  %v411_v32 = vadd.f32 %v765_v28, %v949_v48 }
  0xfb   : > { %568 = vst [vmem:[%s958_s29 + $0x90] sm:$0xff] %v536_v24  ;;  %v539_v30 = vsel %vm475_vm9, %v401_v16, %v507_v22  ;;  %555 = vst [vmem:[%s958_s29 + $0x28] sm:$0xff] %v523_v29  ;;  %vm458_vm10 = vcmp.ge.f32.partialorder %v316_v25, 0.0  ;;  %v490_v33 = vmul.f32 0.2, %v316_v25  ;;  %vm474_vm11 = vcmp.ge.f32.partialorder %v396_v26, 0.0  ;;  %v325_v35 = vpop.f32.mrf.mxu0  ;;  %v405_v36 = vpop.f32.mrf.mxu1 }
  0xfc   : > { %571 = vst [vmem:[%s958_s29 + $0xa8] sm:$0xff] %v539_v30  ;;  %v506_v34 = vmul.f32 0.2, %v396_v26  ;;  %vm461_vm12 = vcmp.ge.f32.partialorder %v331_v31, 0.0  ;;  %v493_v37 = vmul.f32 0.2, %v331_v31  ;;  %v326_v41 = vadd.f32 %v949_v48, %v325_v35 }
  0xfd   : > { %vm477_vm13 = vcmp.ge.f32.partialorder %v411_v32, 0.0  ;;  %v509_v38 = vmul.f32 0.2, %v411_v32  ;;  %v522_v39 = vsel %vm458_vm10, %v316_v25, %v490_v33  ;;  %v406_v42 = vadd.f32 %v949_v48, %v405_v36  ;;  %v744_v43 = vpop.f32.mrf.mxu0  ;;  %v768_v44 = vpop.f32.mrf.mxu1 }
  0xfe   : > { %v538_v40 = vsel %vm474_vm11, %v396_v26, %v506_v34  ;;  %554 = vst [vmem:[%s958_s29 + $0x20] sm:$0xff] %v522_v39  ;;  %v525_v45 = vsel %vm461_vm12, %v331_v31, %v493_v37  ;;  %v341_v47 = vadd.f32 %v744_v43, %v949_v48  ;;  %v421_v49 = vadd.f32 %v768_v44, %v949_v48 }
  0xff   : > { %570 = vst [vmem:[%s958_s29 + $0xa0] sm:$0xff] %v538_v40  ;;  %v541_v46 = vsel %vm477_vm13, %v411_v32, %v509_v38  ;;  %557 = vst [vmem:[%s958_s29 + $0x38] sm:$0xff] %v525_v45  ;;  %vm460_vm14 = vcmp.ge.f32.partialorder %v326_v41, 0.0  ;;  %v492_v50 = vmul.f32 0.2, %v326_v41  ;;  %vm476_vm15 = vcmp.ge.f32.partialorder %v406_v42, 0.0  ;;  %v335_v52 = vpop.f32.mrf.mxu0  ;;  %v415_v53 = vpop.f32.mrf.mxu1 }
 0x100   : > { %573 = vst [vmem:[%s958_s29 + $0xb8] sm:$0xff] %v541_v46  ;;  %v508_v51 = vmul.f32 0.2, %v406_v42  ;;  %vm463_vm0 = vcmp.ge.f32.partialorder %v341_v47, 0.0  ;;  %v495_v54 = vmul.f32 0.2, %v341_v47  ;;  %v336_v58 = vadd.f32 %v949_v48, %v335_v52 }
 0x101   : > { %vm479_vm1 = vcmp.ge.f32.partialorder %v421_v49, 0.0  ;;  %v511_v55 = vmul.f32 0.2, %v421_v49  ;;  %v524_v56 = vsel %vm460_vm14, %v326_v41, %v492_v50  ;;  %v416_v59 = vadd.f32 %v949_v48, %v415_v53  ;;  %v747_v60 = vpop.f32.mrf.mxu0  ;;  %v771_v61 = vpop.f32.mrf.mxu1 }
 0x102   : > { %v540_v57 = vsel %vm476_vm15, %v406_v42, %v508_v51  ;;  %556 = vst [vmem:[%s958_s29 + $0x30] sm:$0xff] %v524_v56  ;;  %v527_v62 = vsel %vm463_vm0, %v341_v47, %v495_v54  ;;  %v351_v0 = vadd.f32 %v747_v60, %v949_v48  ;;  %v431_v1 = vadd.f32 %v771_v61, %v949_v48 }
 0x103   : > { %572 = vst [vmem:[%s958_s29 + $0xb0] sm:$0xff] %v540_v57  ;;  %v543_v63 = vsel %vm479_vm1, %v421_v49, %v511_v55  ;;  %559 = vst [vmem:[%s958_s29 + $0x48] sm:$0xff] %v527_v62  ;;  %vm462_vm2 = vcmp.ge.f32.partialorder %v336_v58, 0.0  ;;  %v494_v2 = vmul.f32 0.2, %v336_v58  ;;  %vm478_vm3 = vcmp.ge.f32.partialorder %v416_v59, 0.0  ;;  %v345_v4 = vpop.f32.mrf.mxu0  ;;  %v425_v5 = vpop.f32.mrf.mxu1 }
 0x104   : > { %575 = vst [vmem:[%s958_s29 + $0xc8] sm:$0xff] %v543_v63  ;;  %v510_v3 = vmul.f32 0.2, %v416_v59  ;;  %vm465_vm4 = vcmp.ge.f32.partialorder %v351_v0, 0.0  ;;  %v497_v6 = vmul.f32 0.2, %v351_v0  ;;  %v346_v10 = vadd.f32 %v949_v48, %v345_v4 }
 0x105   : > { %vm481_vm5 = vcmp.ge.f32.partialorder %v431_v1, 0.0  ;;  %v513_v7 = vmul.f32 0.2, %v431_v1  ;;  %v526_v8 = vsel %vm462_vm2, %v336_v58, %v494_v2  ;;  %v426_v11 = vadd.f32 %v949_v48, %v425_v5  ;;  %v750_v12 = vpop.f32.mrf.mxu0  ;;  %v774_v13 = vpop.f32.mrf.mxu1 }
 0x106   : > { %v542_v9 = vsel %vm478_vm3, %v416_v59, %v510_v3  ;;  %558 = vst [vmem:[%s958_s29 + $0x40] sm:$0xff] %v526_v8  ;;  %v529_v14 = vsel %vm465_vm4, %v351_v0, %v497_v6  ;;  %v361_v16 = vadd.f32 %v750_v12, %v949_v48  ;;  %v441_v17 = vadd.f32 %v774_v13, %v949_v48 }
 0x107   : > { %574 = vst [vmem:[%s958_s29 + $0xc0] sm:$0xff] %v542_v9  ;;  %v545_v15 = vsel %vm481_vm5, %v431_v1, %v513_v7  ;;  %561 = vst [vmem:[%s958_s29 + $0x58] sm:$0xff] %v529_v14  ;;  %vm464_vm6 = vcmp.ge.f32.partialorder %v346_v10, 0.0  ;;  %v496_v18 = vmul.f32 0.2, %v346_v10  ;;  %vm480_vm7 = vcmp.ge.f32.partialorder %v426_v11, 0.0  ;;  %v355_v20 = vpop.f32.mrf.mxu0  ;;  %v435_v21 = vpop.f32.mrf.mxu1 }
 0x108   : > { %577 = vst [vmem:[%s958_s29 + $0xd8] sm:$0xff] %v545_v15  ;;  %v512_v19 = vmul.f32 0.2, %v426_v11  ;;  %vm467_vm8 = vcmp.ge.f32.partialorder %v361_v16, 0.0  ;;  %v499_v22 = vmul.f32 0.2, %v361_v16  ;;  %v356_v26 = vadd.f32 %v949_v48, %v355_v20 }
 0x109   : > { %vm483_vm9 = vcmp.ge.f32.partialorder %v441_v17, 0.0  ;;  %v515_v23 = vmul.f32 0.2, %v441_v17  ;;  %v528_v24 = vsel %vm464_vm6, %v346_v10, %v496_v18  ;;  %v436_v27 = vadd.f32 %v949_v48, %v435_v21  ;;  %v753_v28 = vpop.f32.mrf.mxu0  ;;  %v777_v29 = vpop.f32.mrf.mxu1 }
 0x10a   : > { %v544_v25 = vsel %vm480_vm7, %v426_v11, %v512_v19  ;;  %560 = vst [vmem:[%s958_s29 + $0x50] sm:$0xff] %v528_v24  ;;  %v531_v30 = vsel %vm467_vm8, %v361_v16, %v499_v22  ;;  %v371_v32 = vadd.f32 %v753_v28, %v949_v48  ;;  %v451_v33 = vadd.f32 %v777_v29, %v949_v48 }
 0x10b   : > { %576 = vst [vmem:[%s958_s29 + $0xd0] sm:$0xff] %v544_v25  ;;  %v547_v31 = vsel %vm483_vm9, %v441_v17, %v515_v23  ;;  %563 = vst [vmem:[%s958_s29 + $0x68] sm:$0xff] %v531_v30  ;;  %vm466_vm10 = vcmp.ge.f32.partialorder %v356_v26, 0.0  ;;  %v498_v34 = vmul.f32 0.2, %v356_v26  ;;  %vm482_vm11 = vcmp.ge.f32.partialorder %v436_v27, 0.0  ;;  %v365_v36 = vpop.f32.mrf.mxu0  ;;  %v445_v37 = vpop.f32.mrf.mxu1 }
 0x10c   : > { %579 = vst [vmem:[%s958_s29 + $0xe8] sm:$0xff] %v547_v31  ;;  %v514_v35 = vmul.f32 0.2, %v436_v27  ;;  %vm469_vm12 = vcmp.ge.f32.partialorder %v371_v32, 0.0  ;;  %v501_v38 = vmul.f32 0.2, %v371_v32  ;;  %v366_v42 = vadd.f32 %v949_v48, %v365_v36 }
 0x10d   : > { %vm485_vm13 = vcmp.ge.f32.partialorder %v451_v33, 0.0  ;;  %v517_v39 = vmul.f32 0.2, %v451_v33  ;;  %v530_v40 = vsel %vm466_vm10, %v356_v26, %v498_v34  ;;  %v446_v43 = vadd.f32 %v949_v48, %v445_v37 }
 0x10e   : > { %v546_v41 = vsel %vm482_vm11, %v436_v27, %v514_v35  ;;  %562 = vst [vmem:[%s958_s29 + $0x60] sm:$0xff] %v530_v40  ;;  %v533_v44 = vsel %vm469_vm12, %v371_v32, %v501_v38  ;;  %vm468_vm14 = vcmp.ge.f32.partialorder %v366_v42, 0.0  ;;  %v500_v46 = vmul.f32 0.2, %v366_v42 }
 0x10f   : > { %578 = vst [vmem:[%s958_s29 + $0xe0] sm:$0xff] %v546_v41  ;;  %v549_v45 = vsel %vm485_vm13, %v451_v33, %v517_v39  ;;  %565 = vst [vmem:[%s958_s29 + $0x78] sm:$0xff] %v533_v44  ;;  %vm484_vm15 = vcmp.ge.f32.partialorder %v446_v43, 0.0  ;;  %v516_v47 = vmul.f32 0.2, %v446_v43 }
 0x110   : > { %581 = vst [vmem:[%s958_s29 + $0xf8] sm:$0xff] %v549_v45  ;;  %v532_v49 = vsel %vm468_vm14, %v366_v42, %v500_v46 }
 0x111   : > { %v548_v50 = vsel %vm484_vm15, %v446_v43, %v516_v47  ;;  %564 = vst [vmem:[%s958_s29 + $0x70] sm:$0xff] %v532_v49 }
 0x112   : > { %580 = vst [vmem:[%s958_s29 + $0xf0] sm:$0xff] %v548_v50 }
 0x113 PF: > { %s13_s12 = sadd.s32 1, %s824_s12  }
 0x114   : > { %p10_p4 = scmp.ge.s32.totalorder %s13_s12, 4  }
 0x116   :  { %12 = sbr.rel (!%p10_p4) target bundleno = 1 (0x1), region = 62 }

// kernel: reverse.1
= control target key start
LH: loop header
LB: loop body
LE: loop exit
PB: predicated region body
PF: predicated region fallthrough
CT: control target
= control target key end

     0   :  { %s344_s0 = inlined_call_operand.vmem [shape: f32[2,16,16,7], index: 0, kind: input, shape index: {}]   ;;  %s345_s1 = inlined_call_operand.vmem [shape: f32[2,16,16,7], index: 1, kind: output, shape index: {}]  }
   0x1   :  { %v112_v0 = vld [vmem:[%s344_s0 + $0x60] sm:$0xff]  ;;  %v113_v1 = vld [vmem:[%s344_s0 + $0xd0] sm:$0xff]  ;;  %v138_v14 = vld [vmem:[%s344_s0 + $0x68] sm:$0xff] }
   0x2   :  { %v115_v2 = vld [vmem:[%s344_s0 + $0x50] sm:$0xff]  ;;  %4 = vst [vmem:[%s345_s1] sm:$0xff] %v112_v0  ;;  %114 = vst [vmem:[%s345_s1 + $0x70] sm:$0xff] %v113_v1  ;;  %v117_v3 = vld [vmem:[%s344_s0 + $0xc0] sm:$0xff] }
   0x3   :  { %116 = vst [vmem:[%s345_s1 + $0x10] sm:$0xff] %v115_v2  ;;  %v119_v4 = vld [vmem:[%s344_s0 + $0x40] sm:$0xff]  ;;  %v121_v5 = vld [vmem:[%s344_s0 + $0xb0] sm:$0xff]  ;;  %118 = vst [vmem:[%s345_s1 + $0x80] sm:$0xff] %v117_v3 }
   0x4   :  { %120 = vst [vmem:[%s345_s1 + $0x20] sm:$0xff] %v119_v4  ;;  %122 = vst [vmem:[%s345_s1 + $0x90] sm:$0xff] %v121_v5  ;;  %v123_v6 = vld [vmem:[%s344_s0 + $0x30] sm:$0xff]  ;;  %v125_v7 = vld [vmem:[%s344_s0 + $0xa0] sm:$0xff] }
   0x5   :  { %v127_v8 = vld [vmem:[%s344_s0 + $0x20] sm:$0xff]  ;;  %124 = vst [vmem:[%s345_s1 + $0x30] sm:$0xff] %v123_v6  ;;  %126 = vst [vmem:[%s345_s1 + $0xa0] sm:$0xff] %v125_v7  ;;  %v129_v9 = vld [vmem:[%s344_s0 + $0x90] sm:$0xff] }
   0x6   :  { %128 = vst [vmem:[%s345_s1 + $0x40] sm:$0xff] %v127_v8  ;;  %v131_v10 = vld [vmem:[%s344_s0 + $0x10] sm:$0xff]  ;;  %v133_v11 = vld [vmem:[%s344_s0 + $0x80] sm:$0xff]  ;;  %130 = vst [vmem:[%s345_s1 + $0xb0] sm:$0xff] %v129_v9 }
   0x7   :  { %132 = vst [vmem:[%s345_s1 + $0x50] sm:$0xff] %v131_v10  ;;  %134 = vst [vmem:[%s345_s1 + $0xc0] sm:$0xff] %v133_v11  ;;  %v49_v12 = vld [vmem:[%s344_s0] sm:$0xff]  ;;  %v136_v13 = vld [vmem:[%s344_s0 + $0x70] sm:$0xff] }
   0x8   :  { %135 = vst [vmem:[%s345_s1 + $0x60] sm:$0xff] %v49_v12  ;;  %137 = vst [vmem:[%s345_s1 + $0xd0] sm:$0xff] %v136_v13  ;;  %v140_v15 = vld [vmem:[%s344_s0 + $0xd8] sm:$0xff]  ;;  %v144_v17 = vld [vmem:[%s344_s0 + $0xc8] sm:$0xff] }
   0x9   :  { %139 = vst [vmem:[%s345_s1 + $0x8] sm:$0xff] %v138_v14  ;;  %v142_v16 = vld [vmem:[%s344_s0 + $0x58] sm:$0xff]  ;;  %141 = vst [vmem:[%s345_s1 + $0x78] sm:$0xff] %v140_v15  ;;  %v146_v18 = vld [vmem:[%s344_s0 + $0x48] sm:$0xff] }
   0xa   :  { %143 = vst [vmem:[%s345_s1 + $0x18] sm:$0xff] %v142_v16  ;;  %145 = vst [vmem:[%s345_s1 + $0x88] sm:$0xff] %v144_v17  ;;  %v148_v19 = vld [vmem:[%s344_s0 + $0xb8] sm:$0xff]  ;;  %v152_v21 = vld [vmem:[%s344_s0 + $0xa8] sm:$0xff] }
   0xb   :  { %v150_v20 = vld [vmem:[%s344_s0 + $0x38] sm:$0xff]  ;;  %147 = vst [vmem:[%s345_s1 + $0x28] sm:$0xff] %v146_v18  ;;  %149 = vst [vmem:[%s345_s1 + $0x98] sm:$0xff] %v148_v19  ;;  %v154_v22 = vld [vmem:[%s344_s0 + $0x28] sm:$0xff] }
   0xc   :  { %151 = vst [vmem:[%s345_s1 + $0x38] sm:$0xff] %v150_v20  ;;  %v156_v23 = vld [vmem:[%s344_s0 + $0x98] sm:$0xff]  ;;  %153 = vst [vmem:[%s345_s1 + $0xa8] sm:$0xff] %v152_v21  ;;  %v160_v25 = vld [vmem:[%s344_s0 + $0x88] sm:$0xff] }
   0xd   :  { %155 = vst [vmem:[%s345_s1 + $0x48] sm:$0xff] %v154_v22  ;;  %157 = vst [vmem:[%s345_s1 + $0xb8] sm:$0xff] %v156_v23  ;;  %v158_v24 = vld [vmem:[%s344_s0 + $0x18] sm:$0xff]  ;;  %v162_v26 = vld [vmem:[%s344_s0 + $0x8] sm:$0xff] }
   0xe   :  { %159 = vst [vmem:[%s345_s1 + $0x58] sm:$0xff] %v158_v24  ;;  %161 = vst [vmem:[%s345_s1 + $0xc8] sm:$0xff] %v160_v25  ;;  %v164_v27 = vld [vmem:[%s344_s0 + $0x78] sm:$0xff] }
   0xf   :  { %163 = vst [vmem:[%s345_s1 + $0x68] sm:$0xff] %v162_v26  ;;  %165 = vst [vmem:[%s345_s1 + $0xd8] sm:$0xff] %v164_v27 }

// kernel: spectral_transform_pallas.5
= control target key start
LH: loop header
LB: loop body
LE: loop exit
PB: predicated region body
PF: predicated region fallthrough
CT: control target
= control target key end

     0   :  { %9 = vsyncpa [#allocation3], 0  ;;  %s1288_s0 = inlined_call_operand.vmem [shape: f32[512,128], index: 0, kind: input, shape index: {}]   ;;  %s1289_s1 = inlined_call_operand.vmem [shape: f32[512,128], index: 1, kind: input, shape index: {}]   ;;  %s1290_s2 = inlined_call_operand.vmem [shape: f32[128,128], index: 2, kind: input, shape index: {}]   ;;  %s1291_s3 = inlined_call_operand.vmem [shape: f32[1,128], index: 3, kind: input, shape index: {}]   ;;  %s1292_s4 = inlined_call_operand.hbm [shape: f32[512,128], index: 4, kind: output, shape index: {}]  }
   0x1   :  { %11 = vsyncpa [#allocation3 + $0x1], 0  ;;  %s992_s15 = smov 0   ;;  %s994_s16 = smov 0  }
   0x2   :  { %s996_s17 = smov 0   ;;  %s998_s18 = smov 0  }
   0x3 LB: > { %s1013_s19 = sadd.s32 4294967295, %s962_s18   ;;  %s685_s20 = sadd.s32 4294967294, %s962_s18   ;;  %s962_s18 = sphi %s998_s18, %s1298_s18   ;;  %s958_s17 = sphi %s996_s17, %s1297_s17   ;;  %s954_s16 = sphi %s994_s16, %s1296_s16   ;;  %s950_s15 = sphi %s992_s15, %s1295_s15  }
   0x4   : > { %s1017_s21 = sadd.s32 1, %s962_s18   ;;  %s118_s22 = sadd.s32 1, %s958_s17 }
   0x5   : > { %s115_s23 = ssub.s32 %s962_s18, %s1017_s21  ;;  %p128_p0 = scmp.ne.s32.totalorder %s958_s17, %s954_s16 }
   0x6   : > { %p116_p1 = scmp.eq.s32.totalorder %s115_s23, 0  ;;  %p129_p2 = scmp.eq.s32.totalorder %s1013_s19, 1 }
   0x7   : > { %p134_p3 = scmp.ne.s32.totalorder %s954_s16, %s950_s15  ;;  %p135_p4 = scmp.eq.s32.totalorder %s685_s20, 1 }
   0x8   : > { %s1028_s24 = scalar_select %p116_p1, %s958_s17, %s118_s22  }
   0x9   : > { %p1030_p5 = por %p129_p2, %p128_p0  ;;  %p1034_p6 = por %p135_p4, %p134_p3 }
   0xa   : > { %p688_p7 = scmp.ge.s32.totalorder %s962_s18, 1  ;;  %p177_p8 = scmp.lt.s32.totalorder %s962_s18, 3 }
   0xc   : > { %p178_p9 = pnand %p688_p7, %p177_p8 }
   0xd   : > { %s690_s13 = sshll.u32 (!%p178_p9), %s1013_s19, 5  ;;  %s700_s12 = sshll.u32 (!%p178_p9), %s1013_s19, 12 }
   0xe   : > { %181 = sbr.rel (%p178_p9) target bundleno = 292 (0x124), region = 36  ;;  %p209_p10 = scmp.lt.s32.totalorder (!%p178_p9), %s690_s13, 63 }
   0xf   : > { %s1236_s22 = scalar_lea.hbm (!%p178_p9), %s1292_s4, %s700_s12  ;;  %s964_s27 = smov (!%p178_p9), [#allocation2]  }
  0x10   : > { %s906_s28 = sshll.u32 (!%p178_p9), %s964_s27, 4  ;;  %s907_s28 = int_to_ptr.vmem [resolvable:$false] %s906_s28 }
  0x11   : > { %s908_s29 = scalar_lea.vmem (!%p178_p9), %s907_s28, 8192 }
  0x13   : > { %v332_v0 = vld [vmem:[%s1290_s2 + $0x78] sm:$0xff]  ;;  %v331_v1 = vld [vmem:[%s1290_s2 + $0x70] sm:$0xff]  ;;  %v330_v2 = vld [vmem:[%s1290_s2 + $0x68] sm:$0xff]  ;;  %s1300_s13 = smov (!%p209_p10, %s690_s13), 63 }
  0x14   : > { %749 = vmatprep.subr.mxu0 %v332_v0  ;;  %829 = vmatprep.subr.mxu1 %v332_v0  ;;  %v329_v3 = vld [vmem:[%s1290_s2 + $0x60] sm:$0xff]  ;;  %v328_v4 = vld [vmem:[%s1290_s2 + $0x58] sm:$0xff]  ;;  %v327_v5 = vld [vmem:[%s1290_s2 + $0x50] sm:$0xff]  ;;  %s691_s7 = sshll.u32 %s1300_s13, 3 }
  0x15   : > { %750 = vmatpush3.msra.mxu0 %v332_v0  ;;  %845 = vmatpush3.msra.mxu1 %v332_v0  ;;  %v326_v6 = vld [vmem:[%s1290_s2 + $0x48] sm:$0xff]  ;;  %v325_v7 = vld [vmem:[%s1290_s2 + $0x40] sm:$0xff]  ;;  %v324_v8 = vld [vmem:[%s1290_s2 + $0x38] sm:$0xff]  ;;  %s1083_s20 = scalar_lea.vmem %s1288_s0, %s691_s7  ;;  %s1088_s23 = scalar_lea.vmem %s1289_s1, %s691_s7 }
  0x16   : > { %751 = vmatprep.subr.mxu0 %v331_v1  ;;  %830 = vmatprep.subr.mxu1 %v331_v1  ;;  %v323_v9 = vld [vmem:[%s1290_s2 + $0x30] sm:$0xff]  ;;  %v322_v10 = vld [vmem:[%s1290_s2 + $0x28] sm:$0xff]  ;;  %v321_v11 = vld [vmem:[%s1290_s2 + $0x20] sm:$0xff]  ;;  %s205_s7 = sand.u32 1, %s954_s16  }
  0x17   : > { %752 = vmatpush3.msra.mxu0 %v331_v1  ;;  %846 = vmatpush3.msra.mxu1 %v331_v1  ;;  %v320_v12 = vld [vmem:[%s1290_s2 + $0x18] sm:$0xff]  ;;  %v319_v13 = vld [vmem:[%s1290_s2 + $0x10] sm:$0xff]  ;;  %v318_v14 = vld [vmem:[%s1290_s2 + $0x8] sm:$0xff]  ;;  %s689_s8 = sshll.u32 %s205_s7, 8  ;;  %s1248_s19 = scalar_lea.sflag [#allocation3], %s205_s7 }
  0x18   : > { %753 = vmatprep.subr.mxu0 %v330_v2  ;;  %831 = vmatprep.subr.mxu1 %v330_v2  ;;  %v221_v15 = vld [vmem:[%s1083_s20] sm:$0xff]  ;;  %v222_v20 = vld [vmem:[%s1083_s20 + $0x8] sm:$0xff]  ;;  %v223_v24 = vld [vmem:[%s1083_s20 + $0x10] sm:$0xff]  ;;  %s1173_s11 = scalar_lea.vmem [#allocation2], %s689_s8 }
  0x19   : > { %754 = vmatpush3.msra.mxu0 %v330_v2  ;;  %847 = vmatpush3.msra.mxu1 %v330_v2  ;;  %v253_v16 = vld [vmem:[%s1088_s23] sm:$0xff]  ;;  %v254_v21 = vld [vmem:[%s1088_s23 + $0x8] sm:$0xff]  ;;  %v255_v25 = vld [vmem:[%s1088_s23 + $0x10] sm:$0xff]  ;;  %s611_s14 = sshll.u32 %s1173_s11, 4  ;;  %s1238_s14 = int_to_ptr.vmem [resolvable:$true] %s611_s14 }
  0x1a   : > { %755 = vmatprep.subr.mxu0 %v329_v3  ;;  %832 = vmatprep.subr.mxu1 %v329_v3  ;;  %v237_v17 = vld [vmem:[%s1083_s20 + $0x80] sm:$0xff]  ;;  %v238_v22 = vld [vmem:[%s1083_s20 + $0x88] sm:$0xff]  ;;  %v239_v26 = vld [vmem:[%s1083_s20 + $0x90] sm:$0xff]  ;;  %v285_v28 = vadd.f32 %v253_v16, %v221_v15  ;;  %v286_v30 = vadd.f32 %v254_v21, %v222_v20  ;;  %v287_v34 = vadd.f32 %v255_v25, %v223_v24  ;;  %p909_p0 = scmp.lt.s32.totalorder %s1238_s14, %s907_s28 }
  0x1b   : > { %756 = vmatpush3.msra.mxu0 %v329_v3  ;;  %848 = vmatpush3.msra.mxu1 %v329_v3  ;;  %v317_v18 = vld [vmem:[%s1290_s2] sm:$0xff]  ;;  %v270_v23 = vld [vmem:[%s1088_s23 + $0x88] sm:$0xff]  ;;  %v271_v27 = vld [vmem:[%s1088_s23 + $0x90] sm:$0xff] }
  0x1c   : > { %757 = vmatprep.subr.mxu0 %v328_v4  ;;  %833 = vmatprep.subr.mxu1 %v328_v4  ;;  %v269_v19 = vld [vmem:[%s1088_s23 + $0x80] sm:$0xff]  ;;  %v302_v31 = vadd.f32 %v270_v23, %v238_v22  ;;  %v224_v32 = vld [vmem:[%s1083_s20 + $0x18] sm:$0xff]  ;;  %v303_v35 = vadd.f32 %v271_v27, %v239_v26  ;;  %v226_v44 = vld [vmem:[%s1083_s20 + $0x28] sm:$0xff] }
  0x1d   : > { %758 = vmatpush3.msra.mxu0 %v328_v4  ;;  %849 = vmatpush3.msra.mxu1 %v328_v4  ;;  %v301_v29 = vadd.f32 %v269_v19, %v237_v17  ;;  %v256_v33 = vld [vmem:[%s1088_s23 + $0x18] sm:$0xff]  ;;  %v225_v38 = vld [vmem:[%s1083_s20 + $0x20] sm:$0xff]  ;;  %v258_v45 = vld [vmem:[%s1088_s23 + $0x28] sm:$0xff] }
  0x1e   : > { %759 = vmatprep.subr.mxu0 %v327_v5  ;;  %834 = vmatprep.subr.mxu1 %v327_v5  ;;  %v240_v36 = vld [vmem:[%s1083_s20 + $0x98] sm:$0xff]  ;;  %v257_v39 = vld [vmem:[%s1088_s23 + $0x20] sm:$0xff]  ;;  %v288_v42 = vadd.f32 %v256_v33, %v224_v32  ;;  %v242_v48 = vld [vmem:[%s1083_s20 + $0xa8] sm:$0xff]  ;;  %v290_v54 = vadd.f32 %v258_v45, %v226_v44 }
  0x1f   : > { %760 = vmatpush3.msra.mxu0 %v327_v5  ;;  %850 = vmatpush3.msra.mxu1 %v327_v5  ;;  %v272_v37 = vld [vmem:[%s1088_s23 + $0x98] sm:$0xff]  ;;  %v241_v40 = vld [vmem:[%s1083_s20 + $0xa0] sm:$0xff]  ;;  %v289_v46 = vadd.f32 %v257_v39, %v225_v38  ;;  %v274_v49 = vld [vmem:[%s1088_s23 + $0xa8] sm:$0xff] }
  0x20   : > { %761 = vmatprep.subr.mxu0 %v326_v6  ;;  %835 = vmatprep.subr.mxu1 %v326_v6  ;;  %v273_v41 = vld [vmem:[%s1088_s23 + $0xa0] sm:$0xff]  ;;  %v304_v43 = vadd.f32 %v272_v37, %v240_v36  ;;  %v227_v50 = vld [vmem:[%s1083_s20 + $0x30] sm:$0xff]  ;;  %v306_v55 = vadd.f32 %v274_v49, %v242_v48  ;;  %v228_v56 = vld [vmem:[%s1083_s20 + $0x38] sm:$0xff] }
  0x21   : > { %762 = vmatpush3.msra.mxu0 %v326_v6  ;;  %851 = vmatpush3.msra.mxu1 %v326_v6  ;;  %v305_v47 = vadd.f32 %v273_v41, %v241_v40  ;;  %v259_v51 = vld [vmem:[%s1088_s23 + $0x30] sm:$0xff]  ;;  %v260_v57 = vld [vmem:[%s1088_s23 + $0x38] sm:$0xff]  ;;  %v229_v62 = vld [vmem:[%s1083_s20 + $0x40] sm:$0xff] }
  0x22   : > { %763 = vmatprep.subr.mxu0 %v325_v7  ;;  %836 = vmatprep.subr.mxu1 %v325_v7  ;;  %v243_v52 = vld [vmem:[%s1083_s20 + $0xb0] sm:$0xff]  ;;  %v291_v58 = vadd.f32 %v259_v51, %v227_v50  ;;  %v244_v60 = vld [vmem:[%s1083_s20 + $0xb8] sm:$0xff]  ;;  %v261_v63 = vld [vmem:[%s1088_s23 + $0x40] sm:$0xff]  ;;  %v292_v2 = vadd.f32 %v260_v57, %v228_v56 }
  0x23   : > { %764 = vmatpush3.msra.mxu0 %v325_v7  ;;  %852 = vmatpush3.msra.mxu1 %v325_v7  ;;  %v275_v53 = vld [vmem:[%s1088_s23 + $0xb0] sm:$0xff]  ;;  %v276_v61 = vld [vmem:[%s1088_s23 + $0xb8] sm:$0xff]  ;;  %v245_v0 = vld [vmem:[%s1083_s20 + $0xc0] sm:$0xff]  ;;  %v293_v6 = vadd.f32 %v261_v63, %v229_v62 }
  0x24   : > { %765 = vmatprep.subr.mxu0 %v324_v8  ;;  %837 = vmatprep.subr.mxu1 %v324_v8  ;;  %v307_v59 = vadd.f32 %v275_v53, %v243_v52  ;;  %v277_v1 = vld [vmem:[%s1088_s23 + $0xc0] sm:$0xff]  ;;  %v308_v3 = vadd.f32 %v276_v61, %v244_v60  ;;  %v230_v4 = vld [vmem:[%s1083_s20 + $0x48] sm:$0xff]  ;;  %v232_v16 = vld [vmem:[%s1083_s20 + $0x58] sm:$0xff] }
  0x25   : > { %766 = vmatpush3.msra.mxu0 %v324_v8  ;;  %853 = vmatpush3.msra.mxu1 %v324_v8  ;;  %v262_v5 = vld [vmem:[%s1088_s23 + $0x48] sm:$0xff]  ;;  %v309_v7 = vadd.f32 %v277_v1, %v245_v0  ;;  %v264_v17 = vld [vmem:[%s1088_s23 + $0x58] sm:$0xff]  ;;  %v233_v22 = vld [vmem:[%s1083_s20 + $0x60] sm:$0xff] }
  0x26   : > { %767 = vmatprep.subr.mxu0 %v323_v9  ;;  %838 = vmatprep.subr.mxu1 %v323_v9  ;;  %v246_v8 = vld [vmem:[%s1083_s20 + $0xc8] sm:$0xff]  ;;  %v248_v20 = vld [vmem:[%s1083_s20 + $0xd8] sm:$0xff]  ;;  %v265_v23 = vld [vmem:[%s1088_s23 + $0x60] sm:$0xff]  ;;  %v296_v26 = vadd.f32 %v264_v17, %v232_v16 }
  0x27   : > { %768 = vmatpush3.msra.mxu0 %v323_v9  ;;  %854 = vmatpush3.msra.mxu1 %v323_v9  ;;  %v278_v9 = vld [vmem:[%s1088_s23 + $0xc8] sm:$0xff]  ;;  %v280_v21 = vld [vmem:[%s1088_s23 + $0xd8] sm:$0xff]  ;;  %v249_v24 = vld [vmem:[%s1083_s20 + $0xe0] sm:$0xff] }
  0x28   : > { %769 = vmatprep.subr.mxu0 %v322_v10  ;;  %839 = vmatprep.subr.mxu1 %v322_v10  ;;  %v310_v15 = vadd.f32 %v278_v9, %v246_v8  ;;  %v281_v25 = vld [vmem:[%s1088_s23 + $0xe0] sm:$0xff]  ;;  %v312_v27 = vadd.f32 %v280_v21, %v248_v20  ;;  %v250_v32 = vld [vmem:[%s1083_s20 + $0xe8] sm:$0xff]  ;;  %v251_v36 = vld [vmem:[%s1083_s20 + $0xf0] sm:$0xff] }
  0x29   : > { %770 = vmatpush3.msra.mxu0 %v322_v10  ;;  %855 = vmatpush3.msra.mxu1 %v322_v10  ;;  %v231_v10 = vld [vmem:[%s1083_s20 + $0x50] sm:$0xff]  ;;  %v282_v33 = vld [vmem:[%s1088_s23 + $0xe8] sm:$0xff]  ;;  %v236_v40 = vld [vmem:[%s1083_s20 + $0x78] sm:$0xff] }
  0x2a   : > { %771 = vmatprep.subr.mxu0 %v321_v11  ;;  %840 = vmatprep.subr.mxu1 %v321_v11  ;;  %v283_v37 = vld [vmem:[%s1088_s23 + $0xf0] sm:$0xff]  ;;  %v314_v39 = vadd.f32 %v282_v33, %v250_v32  ;;  %v252_v44 = vld [vmem:[%s1083_s20 + $0xf8] sm:$0xff]  ;;  %v1169_v48 = vld [vmem:[%s1291_s3] ss:$0 sm:$0xff] }
  0x2b   : > { %772 = vmatpush3.msra.mxu0 %v321_v11  ;;  %856 = vmatpush3.msra.mxu1 %v321_v11  ;;  %v263_v11 = vld [vmem:[%s1088_s23 + $0x50] sm:$0xff]  ;;  %v284_v45 = vld [vmem:[%s1088_s23 + $0xf8] sm:$0xff] }
  0x2c   : > { %773 = vmatprep.subr.mxu0 %v320_v12  ;;  %841 = vmatprep.subr.mxu1 %v320_v12 }
  0x2d   : > { %774 = vmatpush3.msra.mxu0 %v320_v12  ;;  %857 = vmatpush3.msra.mxu1 %v320_v12  ;;  %v247_v12 = vld [vmem:[%s1083_s20 + $0xd0] sm:$0xff] }
  0x2e   : > { %775 = vmatprep.subr.mxu0 %v319_v13  ;;  %842 = vmatprep.subr.mxu1 %v319_v13 }
  0x2f   : > { %776 = vmatpush3.msra.mxu0 %v319_v13  ;;  %858 = vmatpush3.msra.mxu1 %v319_v13  ;;  %v279_v13 = vld [vmem:[%s1088_s23 + $0xd0] sm:$0xff] }
  0x30   : > { %777 = vmatprep.subr.mxu0 %v318_v14  ;;  %843 = vmatprep.subr.mxu1 %v318_v14  ;;  %v311_v19 = vadd.f32 %v279_v13, %v247_v12 }
  0x31   : > { %778 = vmatpush3.msra.mxu0 %v318_v14  ;;  %859 = vmatpush3.msra.mxu1 %v318_v14  ;;  %v294_v14 = vadd.f32 %v262_v5, %v230_v4 }
  0x32   : > { %779 = vmatprep.subr.mxu0 %v317_v18  ;;  %844 = vmatprep.subr.mxu1 %v317_v18 }
  0x33   : > { %780 = vmatpush3.msra.mxu0 %v317_v18  ;;  %860 = vmatpush3.msra.mxu1 %v317_v18  ;;  %v295_v18 = vadd.f32 %v263_v11, %v231_v10 }
  0x34   : > { %781 = vmatprep.mubr.f32.mxu0 %v285_v28  ;;  %805 = vmatprep.mubr.f32.mxu1 %v301_v29  ;;  %v234_v28 = vld [vmem:[%s1083_s20 + $0x68] sm:$0xff] }
  0x35   : > { %782 = vmatmul.mubr.f32.vlgmr.msra.gmra.mxu0 %v286_v30  ;;  %806 = vmatmul.mubr.f32.vlgmr.msra.gmra.mxu1 %v302_v31  ;;  %v266_v29 = vld [vmem:[%s1088_s23 + $0x68] sm:$0xff]  ;;  %v297_v30 = vadd.f32 %v265_v23, %v233_v22  ;;  %v313_v31 = vadd.f32 %v281_v25, %v249_v24 }
  0x36   : > { %784 = vmatprep.mubr.f32.mxu0 %v287_v34  ;;  %808 = vmatprep.mubr.f32.mxu1 %v303_v35  ;;  %v235_v34 = vld [vmem:[%s1083_s20 + $0x70] sm:$0xff]  ;;  %v298_v38 = vadd.f32 %v266_v29, %v234_v28 }
  0x37   : > { %v267_v35 = vld [vmem:[%s1088_s23 + $0x70] sm:$0xff] }
  0x38   : > { %v299_v41 = vadd.f32 %v267_v35, %v235_v34 }
  0x39   : > { %785 = vmatmul.mubr.f32.gmra.mxu0 %v288_v42  ;;  %809 = vmatmul.mubr.f32.gmra.mxu1 %v304_v43  ;;  %v315_v42 = vadd.f32 %v283_v37, %v251_v36  ;;  %v268_v43 = vld [vmem:[%s1088_s23 + $0x78] sm:$0xff]  ;;  %s902_s23 = scalar_lea.vmem %s1238_s14, 4096 }
  0x3a   : > { %787 = vmatprep.mubr.f32.mxu0 %v289_v46  ;;  %811 = vmatprep.mubr.f32.mxu1 %v305_v47  ;;  %v300_v46 = vadd.f32 %v268_v43, %v236_v40  ;;  %v316_v47 = vadd.f32 %v284_v45, %v252_v44  ;;  %p903_p11 = scmp.ne.s32.totalorder %s1238_s14, %s902_s23  ;;  %p910_p1 = scmp.lt.s32.totalorder %s908_s29, %s902_s23 }
  0x3c   : > { %p904_p12 = pnand %p903_p11, %p1030_p5  ;;  %p911_p2 = por %p910_p1, %p909_p0 }
  0x3d   : > { %788 = vmatmul.mubr.f32.gmra.mxu0 %v290_v54  ;;  %812 = vmatmul.mubr.f32.gmra.mxu1 %v306_v55 }
  0x3e   : > { %790 = vmatprep.mubr.f32.mxu0 %v291_v58  ;;  %814 = vmatprep.mubr.f32.mxu1 %v307_v59  ;;  %p905_p13 = pneg %p904_p12 }
  0x40   : > { %p912_p3 = pnand %p911_p2, %p905_p13 }
  0x41   : > { %791 = vmatmul.mubr.f32.gmra.mxu0 %v292_v2  ;;  %815 = vmatmul.mubr.f32.gmra.mxu1 %v308_v3 }
  0x42   : > { %793 = vmatprep.mubr.f32.mxu0 %v293_v6  ;;  %817 = vmatprep.mubr.f32.mxu1 %v309_v7 }
  0x45   : > { %794 = vmatmul.mubr.f32.gmra.mxu0 %v294_v14  ;;  %818 = vmatmul.mubr.f32.gmra.mxu1 %v310_v15 }
  0x46   : > { %796 = vmatprep.mubr.f32.mxu0 %v295_v18  ;;  %820 = vmatprep.mubr.f32.mxu1 %v311_v19 }
  0x49   : > { %797 = vmatmul.mubr.f32.gmra.mxu0 %v296_v26  ;;  %821 = vmatmul.mubr.f32.gmra.mxu1 %v312_v27 }
  0x4a   : > { %799 = vmatprep.mubr.f32.mxu0 %v297_v30  ;;  %823 = vmatprep.mubr.f32.mxu1 %v313_v31 }
  0x4d   : > { %800 = vmatmul.mubr.f32.gmra.mxu0 %v298_v38  ;;  %824 = vmatmul.mubr.f32.gmra.mxu1 %v314_v39 }
  0x4e   : > { %802 = vmatprep.mubr.f32.mxu0 %v299_v41  ;;  %826 = vmatprep.mubr.f32.mxu1 %v315_v42 }
  0x51   : > { %803 = vmatmul.mubr.f32.gmra.mxu0 %v300_v46  ;;  %827 = vmatmul.mubr.f32.gmra.mxu1 %v316_v47 }
  0xf5   : > { %v783_v49 = vpop.f32.mrf.mxu0  ;;  %v807_v50 = vpop.f32.mrf.mxu1 }
  0xf6   : > { %v412_v51 = vadd.f32 %v783_v49, %v1169_v48  ;;  %v492_v52 = vadd.f32 %v807_v50, %v1169_v48 }
  0xf7   : > { %v406_v53 = vpop.f32.mrf.mxu0  ;;  %v486_v54 = vpop.f32.mrf.mxu1 }
  0xf8   : > { %566 = vst [vmem:[%s1173_s11 + $0x8] sm:$0xff] %v412_v51  ;;  %582 = vst [vmem:[%s1173_s11 + $0x88] sm:$0xff] %v492_v52  ;;  %v407_v55 = vadd.f32 %v1169_v48, %v406_v53  ;;  %v487_v56 = vadd.f32 %v1169_v48, %v486_v54 }
  0xf9   : > { %v786_v57 = vpop.f32.mrf.mxu0  ;;  %v810_v58 = vpop.f32.mrf.mxu1 }
  0xfa   : > { %565 = vst [vmem:[%s1173_s11] sm:$0xff] %v407_v55  ;;  %581 = vst [vmem:[%s1173_s11 + $0x80] sm:$0xff] %v487_v56  ;;  %v422_v59 = vadd.f32 %v786_v57, %v1169_v48  ;;  %v502_v60 = vadd.f32 %v810_v58, %v1169_v48 }
  0xfb   : > { %v416_v61 = vpop.f32.mrf.mxu0  ;;  %v496_v62 = vpop.f32.mrf.mxu1 }
  0xfc   : > { %568 = vst [vmem:[%s1173_s11 + $0x18] sm:$0xff] %v422_v59  ;;  %584 = vst [vmem:[%s1173_s11 + $0x98] sm:$0xff] %v502_v60  ;;  %v417_v63 = vadd.f32 %v1169_v48, %v416_v61  ;;  %v497_v0 = vadd.f32 %v1169_v48, %v496_v62 }
  0xfd   : > { %v789_v1 = vpop.f32.mrf.mxu0  ;;  %v813_v2 = vpop.f32.mrf.mxu1 }
  0xfe   : > { %567 = vst [vmem:[%s1173_s11 + $0x10] sm:$0xff] %v417_v63  ;;  %583 = vst [vmem:[%s1173_s11 + $0x90] sm:$0xff] %v497_v0  ;;  %v432_v3 = vadd.f32 %v789_v1, %v1169_v48  ;;  %v512_v4 = vadd.f32 %v813_v2, %v1169_v48 }
  0xff   : > { %v426_v5 = vpop.f32.mrf.mxu0  ;;  %v506_v6 = vpop.f32.mrf.mxu1 }
 0x100   : > { %570 = vst [vmem:[%s1173_s11 + $0x28] sm:$0xff] %v432_v3  ;;  %586 = vst [vmem:[%s1173_s11 + $0xa8] sm:$0xff] %v512_v4  ;;  %v427_v7 = vadd.f32 %v1169_v48, %v426_v5  ;;  %v507_v8 = vadd.f32 %v1169_v48, %v506_v6 }
 0x101   : > { %v792_v9 = vpop.f32.mrf.mxu0  ;;  %v816_v10 = vpop.f32.mrf.mxu1 }
 0x102   : > { %569 = vst [vmem:[%s1173_s11 + $0x20] sm:$0xff] %v427_v7  ;;  %585 = vst [vmem:[%s1173_s11 + $0xa0] sm:$0xff] %v507_v8  ;;  %v442_v11 = vadd.f32 %v792_v9, %v1169_v48  ;;  %v522_v12 = vadd.f32 %v816_v10, %v1169_v48 }
 0x103   : > { %v436_v13 = vpop.f32.mrf.mxu0  ;;  %v516_v14 = vpop.f32.mrf.mxu1 }
 0x104   : > { %572 = vst [vmem:[%s1173_s11 + $0x38] sm:$0xff] %v442_v11  ;;  %588 = vst [vmem:[%s1173_s11 + $0xb8] sm:$0xff] %v522_v12  ;;  %v437_v15 = vadd.f32 %v1169_v48, %v436_v13  ;;  %v517_v16 = vadd.f32 %v1169_v48, %v516_v14 }
 0x105   : > { %v795_v17 = vpop.f32.mrf.mxu0  ;;  %v819_v18 = vpop.f32.mrf.mxu1 }
 0x106   : > { %571 = vst [vmem:[%s1173_s11 + $0x30] sm:$0xff] %v437_v15  ;;  %587 = vst [vmem:[%s1173_s11 + $0xb0] sm:$0xff] %v517_v16  ;;  %v452_v19 = vadd.f32 %v795_v17, %v1169_v48  ;;  %v532_v20 = vadd.f32 %v819_v18, %v1169_v48 }
 0x107   : > { %v446_v21 = vpop.f32.mrf.mxu0  ;;  %v526_v22 = vpop.f32.mrf.mxu1 }
 0x108   : > { %574 = vst [vmem:[%s1173_s11 + $0x48] sm:$0xff] %v452_v19  ;;  %590 = vst [vmem:[%s1173_s11 + $0xc8] sm:$0xff] %v532_v20  ;;  %v447_v23 = vadd.f32 %v1169_v48, %v446_v21  ;;  %v527_v24 = vadd.f32 %v1169_v48, %v526_v22 }
 0x109   : > { %v798_v25 = vpop.f32.mrf.mxu0  ;;  %v822_v26 = vpop.f32.mrf.mxu1 }
 0x10a   : > { %573 = vst [vmem:[%s1173_s11 + $0x40] sm:$0xff] %v447_v23  ;;  %589 = vst [vmem:[%s1173_s11 + $0xc0] sm:$0xff] %v527_v24  ;;  %v462_v27 = vadd.f32 %v798_v25, %v1169_v48  ;;  %v542_v28 = vadd.f32 %v822_v26, %v1169_v48 }
 0x10b   : > { %v456_v29 = vpop.f32.mrf.mxu0  ;;  %v536_v30 = vpop.f32.mrf.mxu1 }
 0x10c   : > { %576 = vst [vmem:[%s1173_s11 + $0x58] sm:$0xff] %v462_v27  ;;  %592 = vst [vmem:[%s1173_s11 + $0xd8] sm:$0xff] %v542_v28  ;;  %v457_v31 = vadd.f32 %v1169_v48, %v456_v29  ;;  %v537_v32 = vadd.f32 %v1169_v48, %v536_v30 }
 0x10d   : > { %v801_v33 = vpop.f32.mrf.mxu0  ;;  %v825_v34 = vpop.f32.mrf.mxu1 }
 0x10e   : > { %575 = vst [vmem:[%s1173_s11 + $0x50] sm:$0xff] %v457_v31  ;;  %591 = vst [vmem:[%s1173_s11 + $0xd0] sm:$0xff] %v537_v32  ;;  %v472_v35 = vadd.f32 %v801_v33, %v1169_v48  ;;  %v552_v36 = vadd.f32 %v825_v34, %v1169_v48 }
 0x10f   : > { %v466_v37 = vpop.f32.mrf.mxu0  ;;  %v546_v38 = vpop.f32.mrf.mxu1 }
 0x110   : > { %578 = vst [vmem:[%s1173_s11 + $0x68] sm:$0xff] %v472_v35  ;;  %594 = vst [vmem:[%s1173_s11 + $0xe8] sm:$0xff] %v552_v36  ;;  %v467_v39 = vadd.f32 %v1169_v48, %v466_v37  ;;  %v547_v40 = vadd.f32 %v1169_v48, %v546_v38 }
 0x111   : > { %v804_v41 = vpop.f32.mrf.mxu0  ;;  %v828_v42 = vpop.f32.mrf.mxu1 }
 0x112   : > { %577 = vst [vmem:[%s1173_s11 + $0x60] sm:$0xff] %v467_v39  ;;  %593 = vst [vmem:[%s1173_s11 + $0xe0] sm:$0xff] %v547_v40  ;;  %v482_v43 = vadd.f32 %v804_v41, %v1169_v48  ;;  %v562_v44 = vadd.f32 %v828_v42, %v1169_v48 }
 0x113   : > { %v476_v45 = vpop.f32.mrf.mxu0  ;;  %v556_v46 = vpop.f32.mrf.mxu1 }
 0x114   : > { %580 = vst [vmem:[%s1173_s11 + $0x78] sm:$0xff] %v482_v43  ;;  %596 = vst [vmem:[%s1173_s11 + $0xf8] sm:$0xff] %v562_v44  ;;  %v477_v47 = vadd.f32 %v1169_v48, %v476_v45  ;;  %v557_v49 = vadd.f32 %v1169_v48, %v556_v46 }
 0x116   : > { %579 = vst [vmem:[%s1173_s11 + $0x70] sm:$0xff] %v477_v47  ;;  %595 = vst [vmem:[%s1173_s11 + $0xf0] sm:$0xff] %v557_v49 }
 0x117   : > { %915 = shalt.err (!%p912_p3)
}
 0x118   : > { %s916_s30 = scalar_lea.hbm %s1236_s22, 4096  ;;  %s920_s7 = scalar_lea.hbm %s1292_s4, 8192 }
 0x119   : > { %p917_p4 = scmp.ne.s32.totalorder %s1236_s22, %s916_s30  ;;  %p921_p9 = scmp.lt.s32.totalorder %s1236_s22, %s1292_s4 }
 0x11a   : > { %p922_p10 = scmp.lt.s32.totalorder %s920_s7, %s916_s30 }
 0x11b   : > { %p918_p7 = pnand %p917_p4, %p1030_p5 }
 0x11c   : > { %p923_p11 = por %p922_p10, %p921_p9 }
 0x11d   : > { %p919_p8 = pneg %p918_p7 }
 0x11f   : > { %p924_p12 = pnand %p923_p11, %p919_p8 }
 0x121   : > { %927 = shalt.err (!%p924_p12)
}
 0x122   : > { %s965_s10 = smov 128   ;;  %s966_s11 = smov 8  }
 0x123   : > { %861 = dma.vmem_to_hbm [thread:$0]  (%p1030_p5), %s1238_s14, 4096, %s1236_s22, %s1248_s19, %s965_s10, %s965_s10, %s966_s11  }
 0x124 PF: > { %p867_p13 = scmp.ge.s32.totalorder %s962_s18, 2  ;;  %s626_s12 = sand.u32 1, %s950_s15  }
 0x125   : > { %s627_s20 = scalar_lea.sflag [#allocation3], %s626_s12 }
 0x126   : > { %p864_p0 = pnand %p867_p13, %p1034_p6 }
 0x128   : > { %p865_p1 = pneg %p864_p0 }
 0x12a   : > { %945 = dma.done.wait (%p865_p1), %s627_s20, 4096  }
 0x12b   : > { %947 = vsyncadd (%p865_p1), %s627_s20, 4294963200  ;;  %p14_p2 = scmp.ge.s32.totalorder %s1017_s21, 4   ;;  %s1295_s15 = smov %s954_s16 }
 0x12c   : > { %s1296_s16 = smov %s958_s17  ;;  %s1297_s17 = smov %s1028_s24 }
 0x12d   : > { %s1298_s18 = smov %s1017_s21  ;;  %16 = sbr.rel (!%p14_p2) target bundleno = 3 (0x3), region = 74 }
 0x132   :  { %632 = vsyncpa [#allocation3], 1 }
 0x133   :  { %634 = vsyncpa [#allocation3 + $0x1], 1 }

</bundles_post_ra>
